<compile_context>
chip_gen: v7x
topology: tpu7x:2x2x1
jax: 0.10.0
libtpu: 0.0.40
codegen_flags: <defaults>
</compile_context>

<pallas_src>
import jax
import jax.numpy as jnp
from jax import lax
from jax.experimental import pallas as pl
from jax.experimental.pallas import tpu as pltpu


_SQRT2 = 1.4142135623730951


def _gelu_exact(x):
    # nn.GELU() default: 0.5 * x * (1 + erf(x / sqrt(2)))
    return 0.5 * x * (1.0 + lax.erf(x / _SQRT2))


def _mlp_kernel(x_ref, w1_ref, b1_ref, w2_ref, b2_ref, o_ref, acc_ref):
    k = pl.program_id(1)

    @pl.when(k == 0)
    def _():
        acc_ref[...] = jnp.zeros_like(acc_ref)

    cdt = w1_ref.dtype  # compute dtype (bf16 by default)

    # fc1 on the MXU (bf16 operands, f32 accumulation), bias + GELU in f32.
    h = jnp.dot(x_ref[...].astype(cdt), w1_ref[...],
                preferred_element_type=jnp.float32)
    h = _gelu_exact(h + b1_ref[...])

    # fc2: contract this hidden sliver into the f32 accumulator.
    acc_ref[...] += jnp.dot(h.astype(cdt), w2_ref[...],
                            preferred_element_type=jnp.float32)

    @pl.when(k == pl.num_programs(1) - 1)
    def _():
        o_ref[...] = (acc_ref[...] + b2_ref[...]).astype(o_ref.dtype)


def _vmem_capacity_bytes():
    try:
        return int(pltpu.get_tpu_info().vmem_capacity_bytes)
    except Exception:
        return 64 * 1024 * 1024  # conservative v7x per-TC value


def mlp_forward(x, params, *, compute_dtype=jnp.bfloat16, tm_max=512,
                th_override=None):
    """x: (B, N, C_in) -> (B, N, C_out). fc1 -> GELU -> fc2 (dropout identity)."""
    B, N, C_in = x.shape
    w1, b1, w2, b2 = params["w1"], params["b1"], params["w2"], params["b2"]
    H = w1.shape[1]
    C_out = w2.shape[1]
    M = B * N
    out_dtype = x.dtype

    # Activations stay in their input dtype (cast to compute dtype inside the
    # kernel); weights are cast once here; biases stay f32 for the epilogue.
    x2 = x.reshape(M, C_in)
    w1c = w1.astype(compute_dtype)
    w2c = w2.astype(compute_dtype)
    b1_2 = b1.reshape(1, H).astype(jnp.float32)
    b2_2 = b2.reshape(1, C_out).astype(jnp.float32)

    # --- token tile -----------------------------------------------------
    # Big tiles amortize per-step overhead; the last (partial) tile is handled
    # by Pallas edge-block masking, so no wrapper pad/slice is needed.
    tm = tm_max if M >= tm_max else M
    num_row_tiles = pl.cdiv(M, tm)

    x_item = jnp.dtype(x.dtype).itemsize
    o_item = jnp.dtype(out_dtype).itemsize
    c_item = jnp.dtype(compute_dtype).itemsize

    # --- hidden-dim tile (VMEM-budget aware) -----------------------------
    vmem_cap = _vmem_capacity_bytes()
    budget = vmem_cap * 3 // 4  # headroom for compiler-internal scratch

    # x/out tiles are double-buffered by the pipeline; acc is f32 scratch.
    act_bytes = 2 * tm * C_in * x_item + 2 * tm * C_out * o_item + tm * C_out * 4

    def w_bytes(th):
        # W1/W2 slivers (double-buffered) + f32 bias slivers.
        return 2 * ((C_in * th + th * C_out) * c_item + (th + C_out) * 4)

    def fits(th):
        return act_bytes + w_bytes(th) <= budget

    if th_override is not None:
        assert H % th_override == 0, "th_override must divide H"
        tH = th_override
    elif fits(H):
        tH = H  # weights fully VMEM-resident: fetched from HBM exactly once
    else:
        tH = H  # fallback if no aligned divisor fits (rare)
        done = False
        for align in (256, 128):          # prefer 256-aligned for v6e/v7x MXU
            if done:
                break
            for cand in range(1024, 0, -align):
                if H % cand == 0 and fits(cand):
                    tH = cand
                    done = True
                    break

    grid = (num_row_tiles, pl.cdiv(H, tH))
    weights_resident = (tH == H)

    footprint = act_bytes + w_bytes(tH)
    vmem_limit = int(min(vmem_cap,
                         max(footprint + footprint // 4 + (4 << 20), 16 << 20)))

    in_specs = [
        pl.BlockSpec((tm, C_in), lambda i, k: (i, 0)),    # x tile (constant in k)
        pl.BlockSpec((C_in, tH), lambda i, k: (0, k)),    # W1 sliver / resident
        pl.BlockSpec((1, tH), lambda i, k: (0, k)),       # b1 sliver / resident
        pl.BlockSpec((tH, C_out), lambda i, k: (k, 0)),   # W2 sliver / resident
        pl.BlockSpec((1, C_out), lambda i, k: (0, 0)),    # b2 (resident)
    ]
    # TODO(synk): in the streaming (tH < H) path, pipeline_mode=pl.Buffered(3)
    # on the W1/W2 specs can further hide weight-DMA latency.
    out_spec = pl.BlockSpec((tm, C_out), lambda i, k: (i, 0))
    out_shape = jax.ShapeDtypeStruct((M, C_out), out_dtype)

    weight_reads = 1 if weights_resident else int(num_row_tiles)
    cost = pl.CostEstimate(
        flops=int(2 * M * (C_in * H + H * C_out)),
        transcendentals=int(M * H),
        bytes_accessed=int(
            M * C_in * x_item                                  # x read once
            + M * C_out * o_item                               # out written once
            + weight_reads * (C_in * H + H * C_out) * c_item   # weight traffic
            + weight_reads * (H + C_out) * 4                   # biases
        ),
    )

    out2 = pl.pallas_call(
        _mlp_kernel,
        out_shape=out_shape,
        grid_spec=pltpu.PrefetchScalarGridSpec(
            num_scalar_prefetch=0,
            grid=grid,
            in_specs=in_specs,
            out_specs=out_spec,
            scratch_shapes=[pltpu.VMEM((tm, C_out), jnp.float32)],
        ),
        compiler_params=pltpu.CompilerParams(
            dimension_semantics=("parallel", "arbitrary"),
            vmem_limit_bytes=vmem_limit),
        cost_estimate=cost,
    )(x2, w1c, b1_2, w2c, b2_2)

    return out2.reshape(B, N, C_out)


def init_params(key, in_features, hidden_features, out_features):
    """Deterministic synthetic parameters (nn.Linear math, weights pre-transposed)."""
    k1, k2, k3, k4 = jax.random.split(key, 4)
    w1 = jax.random.normal(k1, (in_features, hidden_features), jnp.float32) * 0.02
    b1 = jax.random.normal(k2, (hidden_features,), jnp.float32) * 0.02
    w2 = jax.random.normal(k3, (hidden_features, out_features), jnp.float32) * 0.02
    b2 = jax.random.normal(k4, (out_features,), jnp.float32) * 0.02
    return dict(w1=w1, b1=b1, w2=w2, b2=b2)


def reference_forward(x, params):
    h = x @ params["w1"] + params["b1"]
    h = _gelu_exact(h)
    # dropout (p=0.0, eval mode) is identity
    return h @ params["w2"] + params["b2"]


if __name__ == "__main__":
    # Small ViT-like shapes: batch=2, seq(patches)=8, in=32, hidden=64, out=32
    B, N, C_in, H, C_out = 2, 8, 32, 64, 32
    key = jax.random.PRNGKey(0)
    kx, kp, kp2 = jax.random.split(key, 3)

    params = init_params(kp, C_in, H, C_out)
    x = jax.random.normal(kx, (B, N, C_in), jnp.float32)
    ref = reference_forward(x, params)

    # 1) f32 compute path: exact math check.
    out_f32 = jax.block_until_ready(mlp_forward(x, params, compute_dtype=jnp.float32))
    assert out_f32.shape == (B, N, C_out)
    assert jnp.allclose(out_f32, ref, atol=1e-4, rtol=1e-4), "mismatch (f32 compute)"

    # 2) Default bf16 compute path (MXU-friendly operands, f32 accumulation).
    out_bf16 = jax.block_until_ready(mlp_forward(x, params))
    assert jnp.allclose(out_bf16, ref, atol=2e-2, rtol=2e-2), "mismatch (bf16 compute)"

    # 3) Token count not a multiple of 8 (exercises the edge-block path).
    N2 = 5
    x2 = jax.random.normal(jax.random.PRNGKey(1), (B, N2, C_in), jnp.float32)
    out2 = jax.block_until_ready(mlp_forward(x2, params))
    ref2 = reference_forward(x2, params)
    assert out2.shape == (B, N2, C_out)
    assert jnp.allclose(out2, ref2, atol=2e-2, rtol=2e-2), "mismatch (ragged M)"

    # 4) Forced hidden-dim streaming (tH < H) to exercise the accumulator loop.
    H2 = 256
    params2 = init_params(kp2, C_in, H2, C_out)
    out3 = jax.block_until_ready(
        mlp_forward(x, params2, compute_dtype=jnp.float32, th_override=128))
    ref3 = reference_forward(x, params2)
    assert jnp.allclose(out3, ref3, atol=1e-4, rtol=1e-4), "mismatch (streaming tH)"

    print("KERNEL_OK")
</pallas_src>

<mosaic_0001>
module attributes {stable_mosaic.version = 11 : i64} {
  func.func @_mlp_kernel(%arg0: i32, %arg1: i32, %arg2: memref<16x32xf32, #tpu.memory_space<vmem>>, %arg3: memref<32x64xf32, #tpu.memory_space<vmem>>, %arg4: memref<1x64xf32, #tpu.memory_space<vmem>>, %arg5: memref<64x32xf32, #tpu.memory_space<vmem>>, %arg6: memref<1x32xf32, #tpu.memory_space<vmem>>, %arg7: memref<16x32xf32, #tpu.memory_space<vmem>>, %arg8: memref<16x32xf32, #tpu.memory_space<vmem>>) attributes {dimension_semantics = [#tpu.dimension_semantics<parallel>, #tpu.dimension_semantics<arbitrary>], iteration_bounds = array<i64: 1, 1>, scalar_prefetch = 0 : i64, scratch_operands = 1 : i64, tpu.core_type = #tpu.core_type<tc>, window_params = [{transform_indices = @transform_0, window_bounds = array<i64: 16, 32>}, {transform_indices = @transform_1, window_bounds = array<i64: 32, 64>}, {transform_indices = @transform_2, window_bounds = array<i64: 1, 64>}, {transform_indices = @transform_3, window_bounds = array<i64: 64, 32>}, {pipeline_mode = #tpu.pipeline_mode<synchronous>, transform_indices = @transform_4, window_bounds = array<i64: 1, 32>}, {transform_indices = @transform_5, window_bounds = array<i64: 16, 32>}]} {
    %c0_i32 = arith.constant 0 : i32
    %0 = arith.cmpi eq, %arg1, %c0_i32 : i32
    %1 = arith.extui %0 : i1 to i32
    %c0_i32_0 = arith.constant 0 : i32
    %2 = arith.cmpi ne, %1, %c0_i32_0 : i32
    scf.if %2 {
      %cst_18 = arith.constant 0.000000e+00 : f32
      %25 = vector.broadcast %cst_18 : f32 to vector<16x32xf32>
      %c0_19 = arith.constant 0 : index
      %c0_20 = arith.constant 0 : index
      %26 = vector.load %arg8[%c0_19, %c0_20] : memref<16x32xf32, #tpu.memory_space<vmem>>, vector<16x32xf32>
      tpu.vector_store %arg8[%c0_19, %c0_20], %25 {strides = array<i32>} : memref<16x32xf32, #tpu.memory_space<vmem>>, vector<16x32xf32>,
    } else {
    }
    %c0 = arith.constant 0 : index
    %c0_1 = arith.constant 0 : index
    %3 = vector.load %arg2[%c0, %c0_1] : memref<16x32xf32, #tpu.memory_space<vmem>>, vector<16x32xf32>
    %c0_2 = arith.constant 0 : index
    %c0_3 = arith.constant 0 : index
    %4 = vector.load %arg3[%c0_2, %c0_3] : memref<32x64xf32, #tpu.memory_space<vmem>>, vector<32x64xf32>
    %cst = arith.constant dense<0.000000e+00> : vector<16x64xf32>
    %5 = tpu.matmul %3, %4, %cst {dimension_numbers = #tpu.dot_dimension_numbers<[1], [0], [0], [1], [0, 0, 1, 1], [], []>} : vector<16x32xf32>, vector<32x64xf32>, vector<16x64xf32> -> vector<16x64xf32>
    %c0_4 = arith.constant 0 : index
    %c0_5 = arith.constant 0 : index
    %6 = vector.load %arg4[%c0_4, %c0_5] : memref<1x64xf32, #tpu.memory_space<vmem>>, vector<1x64xf32>
    %7 = vector.broadcast %6 : vector<1x64xf32> to vector<16x64xf32>
    %8 = arith.addf %5, %7 : vector<16x64xf32>
    %cst_6 = arith.constant 5.000000e-01 : f32
    %9 = vector.broadcast %cst_6 : f32 to vector<16x64xf32>
    %10 = arith.mulf %9, %8 : vector<16x64xf32>
    %cst_7 = arith.constant 1.41421354 : f32
    %11 = vector.broadcast %cst_7 : f32 to vector<16x64xf32>
    %12 = arith.divf %8, %11 : vector<16x64xf32>
    %13 = math.erf %12 : vector<16x64xf32>
    %cst_8 = arith.constant 1.000000e+00 : f32
    %14 = vector.broadcast %cst_8 : f32 to vector<16x64xf32>
    %15 = arith.addf %14, %13 : vector<16x64xf32>
    %16 = arith.mulf %10, %15 : vector<16x64xf32>
    %c0_9 = arith.constant 0 : index
    %c0_10 = arith.constant 0 : index
    %17 = vector.load %arg8[%c0_9, %c0_10] : memref<16x32xf32, #tpu.memory_space<vmem>>, vector<16x32xf32>
    %c0_11 = arith.constant 0 : index
    %c0_12 = arith.constant 0 : index
    %18 = vector.load %arg5[%c0_11, %c0_12] : memref<64x32xf32, #tpu.memory_space<vmem>>, vector<64x32xf32>
    %cst_13 = arith.constant dense<0.000000e+00> : vector<16x32xf32>
    %19 = tpu.matmul %16, %18, %cst_13 {dimension_numbers = #tpu.dot_dimension_numbers<[1], [0], [0], [1], [0, 0, 1, 1], [], []>} : vector<16x64xf32>, vector<64x32xf32>, vector<16x32xf32> -> vector<16x32xf32>
    %20 = arith.addf %17, %19 : vector<16x32xf32>
    %c0_14 = arith.constant 0 : index
    %c0_15 = arith.constant 0 : index
    %21 = vector.load %arg8[%c0_14, %c0_15] : memref<16x32xf32, #tpu.memory_space<vmem>>, vector<16x32xf32>
    tpu.vector_store %arg8[%c0_14, %c0_15], %20 {strides = array<i32>} : memref<16x32xf32, #tpu.memory_space<vmem>>, vector<16x32xf32>,
    %c0_i32_16 = arith.constant 0 : i32
    %22 = arith.cmpi eq, %arg1, %c0_i32_16 : i32
    %23 = arith.extui %22 : i1 to i32
    %c0_i32_17 = arith.constant 0 : i32
    %24 = arith.cmpi ne, %23, %c0_i32_17 : i32
    scf.if %24 {
      %c0_18 = arith.constant 0 : index
      %c0_19 = arith.constant 0 : index
      %25 = vector.load %arg8[%c0_18, %c0_19] : memref<16x32xf32, #tpu.memory_space<vmem>>, vector<16x32xf32>
      %c0_20 = arith.constant 0 : index
      %c0_21 = arith.constant 0 : index
      %26 = vector.load %arg6[%c0_20, %c0_21] : memref<1x32xf32, #tpu.memory_space<vmem>>, vector<1x32xf32>
      %27 = vector.broadcast %26 : vector<1x32xf32> to vector<16x32xf32>
      %28 = arith.addf %25, %27 : vector<16x32xf32>
      %c0_22 = arith.constant 0 : index
      %c0_23 = arith.constant 0 : index
      %29 = vector.load %arg7[%c0_22, %c0_23] : memref<16x32xf32, #tpu.memory_space<vmem>>, vector<16x32xf32>
      tpu.vector_store %arg7[%c0_22, %c0_23], %28 {strides = array<i32>} : memref<16x32xf32, #tpu.memory_space<vmem>>, vector<16x32xf32>,
    } else {
    }
    return
  }
  func.func @transform_0(%arg0: i32, %arg1: i32) -> (i32, i32) {
    %c0_i32 = arith.constant 0 : i32
    %c0_i32_0 = arith.constant 0 : i32
    return %arg0, %c0_i32 : i32, i32
  }
  func.func @transform_1(%arg0: i32, %arg1: i32) -> (i32, i32) {
    %c0_i32 = arith.constant 0 : i32
    %c0_i32_0 = arith.constant 0 : i32
    return %c0_i32, %arg1 : i32, i32
  }
  func.func @transform_2(%arg0: i32, %arg1: i32) -> (i32, i32) {
    %c0_i32 = arith.constant 0 : i32
    %c0_i32_0 = arith.constant 0 : i32
    return %c0_i32, %arg1 : i32, i32
  }
  func.func @transform_3(%arg0: i32, %arg1: i32) -> (i32, i32) {
    %c0_i32 = arith.constant 0 : i32
    %c0_i32_0 = arith.constant 0 : i32
    return %arg1, %c0_i32 : i32, i32
  }
  func.func @transform_4(%arg0: i32, %arg1: i32) -> (i32, i32) {
    %c0_i32 = arith.constant 0 : i32
    %c0_i32_0 = arith.constant 0 : i32
    %c0_i32_1 = arith.constant 0 : i32
    return %c0_i32, %c0_i32_0 : i32, i32
  }
  func.func @transform_5(%arg0: i32, %arg1: i32) -> (i32, i32) {
    %c0_i32 = arith.constant 0 : i32
    %c0_i32_0 = arith.constant 0 : i32
    return %arg0, %c0_i32 : i32, i32
  }
}

</mosaic_0001>

<bundles_post_ra>
// kernel: tpu_custom_call.1
= control target key start
LH: loop header
LB: loop body
LE: loop exit
PB: predicated region body
PF: predicated region fallthrough
CT: control target
= control target key end

     0   :  { %vm25_vm0 = vcmask 261120   ;;  %s472_s0 = inlined_call_operand.vmem [shape: f32[16,32], index: 0, kind: input, shape index: {}]   ;;  %s473_s1 = inlined_call_operand.vmem [shape: f32[32,64], index: 1, kind: input, shape index: {}]   ;;  %s474_s2 = inlined_call_operand.vmem [shape: f32[1,64], index: 2, kind: input, shape index: {}]   ;;  %s475_s3 = inlined_call_operand.vmem [shape: f32[64,32], index: 3, kind: input, shape index: {}]   ;;  %s476_s4 = inlined_call_operand.vmem [shape: f32[1,32], index: 4, kind: input, shape index: {}]   ;;  %s477_s5 = inlined_call_operand.hbm [shape: f32[16,32], index: 5, kind: output, shape index: {}]  }
   0x1   :  { %v30_v0 = vld [vmem:[%s473_s1] sm:$0xff]  ;;  %v31_v1 = vld [vmem:[%s473_s1 + $0x8] sm:$0xff]  ;;  %v32_v2 = vld [vmem:[%s473_s1 + $0x10] sm:$0xff] }
   0x2   :  { %v314_v3 = vpack.c.bf16 %v31_v1, %v30_v0  ;;  %v33_v4 = vld [vmem:[%s473_s1 + $0x18] sm:$0xff]  ;;  %v28_v5 = vld [vmem:[%s472_s0] sm:$0xff] }
   0x3   :  { %v318_v6 = vpack.c.bf16 %v33_v4, %v32_v2  ;;  %292 = vmatprep.mubr.msk.f32.mxu0 %vm25_vm0, %v28_v5 }
   0x4   :  { %10 = vsyncpa [#allocation4], 0  ;;  %315 = vmatprep.subr.bf16.mxu0 %v314_v3  ;;  %v29_v7 = vld [vmem:[%s472_s0 + $0x8] sm:$0xff]  ;;  %v136_v8 = vld [vmem:[%s475_s3] sm:$0xff]  ;;  %v370_v20 = vmov 0.0   ;;  %vm144_vm1 = vcmask 523264  }
   0x5   :  { %317 = vmatpush3.bf16.msra.mxu0 %v314_v3  ;;  %v137_v9 = vld [vmem:[%s475_s3 + $0x8] sm:$0xff]  ;;  %v138_v11 = vld [vmem:[%s475_s3 + $0x10] sm:$0xff]  ;;  %v139_v12 = vld [vmem:[%s475_s3 + $0x18] sm:$0xff]  ;;  %27 = vst.msk [vmem:[#allocation2 + $0x8] sm:$0xff] %vm25_vm0, %v370_v20  ;;  %s371_s21 = smov [#allocation3]  }
   0x6   :  { %319 = vmatprep.subr.bf16.mxu0 %v318_v6  ;;  %v322_v10 = vpack.c.bf16 %v137_v9, %v136_v8  ;;  %v326_v13 = vpack.c.bf16 %v139_v12, %v138_v11  ;;  %v140_v14 = vld [vmem:[%s475_s3 + $0x20] sm:$0xff]  ;;  %v141_v15 = vld [vmem:[%s475_s3 + $0x28] sm:$0xff]  ;;  %v142_v17 = vld [vmem:[%s475_s3 + $0x30] sm:$0xff]  ;;  %26 = vst.msk [vmem:[#allocation2] sm:$0xff] %vm25_vm0, %v370_v20  ;;  %s251_s22 = sshll.u32 %s371_s21, 4  ;;  %s252_s22 = int_to_ptr.vmem [resolvable:$true] %s251_s22 }
   0x7   :  { %v330_v16 = vpack.c.bf16 %v141_v15, %v140_v14  ;;  %v143_v18 = vld [vmem:[%s475_s3 + $0x38] sm:$0xff]  ;;  %v262_v21 = vld [vmem:[%s474_s2] ss:$0 sm:$0xff]  ;;  %s346_s23 = scalar_lea.vmem %s252_s22, 256  ;;  %p351_p1 = scmp.lt.s32.totalorder %s252_s22, %s252_s22 }
   0x8   :  { %323 = vmatprep.subr.bf16.mxu1 %v322_v10  ;;  %v334_v19 = vpack.c.bf16 %v143_v18, %v142_v17  ;;  %v267_v42 = vld [vmem:[%s476_s4] ss:$0 sm:$0xff]  ;;  %p347_p0 = scmp.ne.s32.totalorder %s252_s22, %s346_s23  ;;  %p352_p2 = scmp.lt.s32.totalorder %s346_s23, %s346_s23 }
   0x9   :  { %321 = vmatpush3.bf16.msra.mxu0 %v318_v6  ;;  %325 = vmatpush3.bf16.msra.mxu1 %v322_v10 }
   0xa   :  { %327 = vmatprep.subr.bf16.mxu1 %v326_v13  ;;  %p353_p3 = por %p352_p2, %p351_p1 }
   0xc   :  { %293 = vmatmul.mubr.msk.f32.vlgmr.msra.gmra.mrb[0].mxu0 %vm25_vm0, %v29_v7  ;;  %v135_v36 = vld [vmem:[#allocation2 + $0x8] sm:$0xff]  ;;  %p354_p4 = pnand %p353_p3, %p347_p0 }
   0xd   :  { %329 = vmatpush3.bf16.msra.mxu1 %v326_v13  ;;  %v134_v37 = vld [vmem:[#allocation2] sm:$0xff] }
   0xe   :  { %331 = vmatprep.subr.bf16.mxu1 %v330_v16 }
  0x11   :  { %333 = vmatpush3.bf16.msra.mxu1 %v330_v16 }
  0x12   :  { %335 = vmatprep.subr.bf16.mxu1 %v334_v19 }
  0x15   :  { %337 = vmatpush3.bf16.msra.mxu1 %v334_v19 }
  0xdf   :  { %v294_v22 = vpop.f32.mrb[0].mxu0 }
  0xe0   :  { %v120_v23 = vadd.f32 %v294_v22, %v262_v21  ;;  %v114_v24 = vpop.f32.mrb[1].mxu0 }
  0xe1   :  { %v115_v25 = vadd.f32 %v262_v21, %v114_v24 }
  0xe2   :  { %v127_v26 = vmul.f32 0.70710677, %v120_v23  ;;  %v124_v33 = vmul.f32 0.5, %v120_v23 }
  0xe3   :  { %v126_v27 = vmul.f32 0.70710677, %v115_v25  ;;  %v123_v31 = vmul.f32 0.5, %v115_v25 }
  0xe4   :  { %342 = verf.f32 %v127_v26 }
  0xe5   :  { %344 = verf.f32 %v126_v27 }
  0xee   :  { %v343_v28 = vpop.eup %342 }
  0xef   :  { %v345_v29 = vpop.eup %344  ;;  %v131_v30 = vadd.f32 1.0, %v343_v28 }
  0xf0   :  { %v130_v32 = vadd.f32 1.0, %v345_v29 }
  0xf1   :  { %v133_v35 = vmul.f32 %v131_v30, %v124_v33 }
  0xf2   :  { %v132_v34 = vmul.f32 %v130_v32, %v123_v31 }
  0xf4   :  { %311 = vmatprep.mubr.msk.f32.mxu1 %vm144_vm1, %v132_v34 }
  0xf5   :  { %312 = vmatmul.mubr.msk.f32.vlgmr.msra.gmra.mrb[0].mxu1 %vm144_vm1, %v133_v35 }
 0x1c8   :  { %v313_v38 = vpop.f32.mrb[0].mxu1 }
 0x1c9   :  { %v227_v39 = vadd.f32 %v313_v38, %v135_v36  ;;  %v217_v40 = vpop.f32.mrb[1].mxu1 }
 0x1ca   :  { %v226_v41 = vadd.f32 %v217_v40, %v134_v37 }
 0x1cb   :  { %229 = vst.msk [vmem:[#allocation2 + $0x8] sm:$0xff] %vm25_vm0, %v227_v39 }
 0x1cc   :  { %228 = vst.msk [vmem:[#allocation2] sm:$0xff] %vm25_vm0, %v226_v41 }
 0x1d2   :  { %v234_v43 = vld [vmem:[#allocation2 + $0x8] sm:$0xff] }
 0x1d3   :  { %v233_v44 = vld [vmem:[#allocation2] sm:$0xff]  ;;  %v243_v45 = vadd.f32 %v267_v42, %v234_v43 }
 0x1d4   :  { %v242_v46 = vadd.f32 %v267_v42, %v233_v44 }
 0x1d5   :  { %245 = vst.msk [vmem:[#allocation3 + $0x8] sm:$0xff] %vm25_vm0, %v243_v45 }
 0x1d6   :  { %244 = vst.msk [vmem:[#allocation3] sm:$0xff] %vm25_vm0, %v242_v46 }
 0x1d7   :  { %357 = shalt.err (!%p354_p4)
}
 0x1d8   :  { %s358_s25 = scalar_lea.hbm %s477_s5, 256 }
 0x1d9   :  { %p359_p5 = scmp.ne.s32.totalorder %s477_s5, %s358_s25  ;;  %p362_p6 = scmp.lt.u32.totalorder %s358_s25, %s477_s5 }
 0x1db   :  { %p364_p7 = pnand %p362_p6, %p359_p5 }
 0x1dd   :  { %367 = shalt.err (!%p364_p7)
}
 0x1de   :  { %s372_s30 = smov 128   ;;  %s373_s1 = smov 8  }
 0x1df   :  { %257 = dma.vmem_to_hbm [thread:$0]  %s252_s22, 256, %s477_s5, [#allocation4], %s372_s30, %s372_s30, %s373_s1  }
 0x1e0   :  { %368 = dma.done.wait [#allocation4], 256  }
 0x1e1   :  { %369 = vsyncadd [#allocation4], 4294967040 }
 0x1e2   :  { %261 = vsyncpa [#allocation4], 1 }

</bundles_post_ra>
